<compile_context>
chip_gen: v5e
topology: v5e:2x2
jax: 0.10.0
libtpu: 0.0.40
codegen_flags: <defaults>
</compile_context>

<pallas_src>
import jax
import jax.numpy as jnp
from jax import lax
from jax.experimental import pallas as pl
from jax.experimental.pallas import tpu as pltpu

EPS = 1e-5
_LANE = 128
_SUBLANE = 8
_VMEM_LIMIT = 32 * 1024 * 1024        # explicit scoped-VMEM limit (safe on all gens)
_VMEM_TILE_BUDGET = 8 * 1024 * 1024   # budget for double-buffered per-step tiles


def _round_up(x, m):
    return (x + m - 1) // m * m


def _pick_tb(n, per_batch_bytes):
    """Largest divisor of n whose double-buffered tiles fit the VMEM budget."""
    cap = max(1, _VMEM_TILE_BUDGET // max(2 * per_batch_bytes, 1))
    tb = 1
    for d in range(1, n + 1):
        if n % d == 0 and d <= cap:
            tb = d
    return tb


def _mish(x):
    # Numerically stable softplus built from exp/log (EUP ops).
    sp = jnp.maximum(x, 0.0) + jnp.log(1.0 + jnp.exp(-jnp.abs(x)))
    return x * jnp.tanh(sp)


def conv1d_bn_mish(x, weight, gamma, beta):
    """x: (N, C_in, L); weight: (C_out, C_in, K); gamma/beta: (C_out,). Returns (N, C_out, L_out)."""
    N, C_in, L = x.shape
    C_out, _, K = weight.shape
    L_out = L - K + 1                      # stride=1, padding=0, dilation=1, groups=1
    assert L_out >= 1

    L_out_pad = _round_up(L_out, _LANE)               # lane-dense output width
    L_pad = _round_up(L_out_pad + K - 1, _LANE)       # input width incl. tap halo
    C_in_pad = _round_up(C_in, _SUBLANE)              # sublane-aligned channels
    KC = K * C_in_pad

    f32 = jnp.float32
    # Zero-pad channels (sublane alignment) and length (lane alignment + halo).
    x_p = jnp.pad(x.astype(f32), ((0, 0), (0, C_in_pad - C_in), (0, L_pad - L)))
    w_p = jnp.pad(weight.astype(f32), ((0, 0), (0, C_in_pad - C_in), (0, 0)))
    # Tap-major flatten: row index = k*C_in_pad + ci (matches the in-kernel stack order).
    w_flat = jnp.transpose(w_p, (0, 2, 1)).reshape(C_out, KC)
    gamma2 = gamma.reshape(C_out, 1).astype(f32)
    beta2 = beta.reshape(C_out, 1).astype(f32)

    per_batch_bytes = 4 * (C_in_pad * L_pad + C_out * L_out_pad)
    TB = _pick_tb(N, per_batch_bytes)
    G = N // TB
    m_total = N * L_out                    # rows entering the BN statistics

    def build_stack(xb):
        # (C_in_pad, L_pad) -> (K*C_in_pad, L_out_pad) im2col stack of tap-shifted views.
        cols = [xb[:, k:k + L_out_pad] for k in range(K)]
        return jnp.concatenate(cols, axis=0) if K > 1 else cols[0]

    # ------------- pass 1: conv + global BN stats -> fused scale/shift -------------
    def stats_kernel(x_ref, w_ref, gamma_ref, beta_ref,
                     scale_ref, shift_ref, sum_l, sumsq_l):
        g = pl.program_id(0)

        @pl.when(g == 0)
        def _():
            sum_l[...] = jnp.zeros_like(sum_l)
            sumsq_l[...] = jnp.zeros_like(sumsq_l)

        for b in range(TB):                                   # TB small & static
            xs = build_stack(x_ref[b])                        # (KC, L_out_pad)
            y = jnp.dot(w_ref[...], xs,                       # one deep MXU matmul
                        preferred_element_type=jnp.float32)   # (C_out, L_out_pad)
            sum_l[...] += y                                   # per-lane partial sums
            sumsq_l[...] += y * y                             # (cross-lane reduce deferred)

        @pl.when(g == pl.num_programs(0) - 1)
        def _():
            lane = lax.broadcasted_iota(jnp.int32, (C_out, L_out_pad), 1)
            valid = lane < L_out                              # exclude padded columns
            s = jnp.sum(jnp.where(valid, sum_l[...], 0.0), axis=1, keepdims=True)
            ss = jnp.sum(jnp.where(valid, sumsq_l[...], 0.0), axis=1, keepdims=True)
            mean = s * (1.0 / m_total)
            var = jnp.maximum(ss * (1.0 / m_total) - mean * mean, 0.0)  # clamp vs cancellation
            scale = gamma_ref[...] * lax.rsqrt(var + EPS)
            scale_ref[...] = scale
            shift_ref[...] = beta_ref[...] - mean * scale

    scale, shift = pl.pallas_call(
        stats_kernel,
        out_shape=(jax.ShapeDtypeStruct((C_out, 1), f32),
                   jax.ShapeDtypeStruct((C_out, 1), f32)),
        grid=(G,),
        in_specs=[
            pl.BlockSpec((TB, C_in_pad, L_pad), lambda g: (g, 0, 0)),
            pl.BlockSpec((C_out, KC), lambda g: (0, 0)),
            pl.BlockSpec((C_out, 1), lambda g: (0, 0)),
            pl.BlockSpec((C_out, 1), lambda g: (0, 0)),
        ],
        out_specs=(pl.BlockSpec((C_out, 1), lambda g: (0, 0)),
                   pl.BlockSpec((C_out, 1), lambda g: (0, 0))),
        scratch_shapes=[pltpu.VMEM((C_out, L_out_pad), f32),
                        pltpu.VMEM((C_out, L_out_pad), f32)],
        # Stats accumulators are resident across the grid -> "arbitrary".
        compiler_params=pltpu.CompilerParams(
            dimension_semantics=("arbitrary",),
            vmem_limit_bytes=_VMEM_LIMIT),
    )(x_p, w_flat, gamma2, beta2)

    # ------------- pass 2: recompute conv + normalize + Mish (parallel) -------------
    def apply_kernel(x_ref, w_ref, scale_ref, shift_ref, out_ref):
        for b in range(TB):
            xs = build_stack(x_ref[b])
            y = jnp.dot(w_ref[...], xs, preferred_element_type=jnp.float32)
            yn = y * scale_ref[...] + shift_ref[...]
            out_ref[b] = _mish(yn)                            # lane-dense (128-mult) store

    out_pad = pl.pallas_call(
        apply_kernel,
        out_shape=jax.ShapeDtypeStruct((N, C_out, L_out_pad), f32),
        grid=(G,),
        in_specs=[
            pl.BlockSpec((TB, C_in_pad, L_pad), lambda g: (g, 0, 0)),
            pl.BlockSpec((C_out, KC), lambda g: (0, 0)),
            pl.BlockSpec((C_out, 1), lambda g: (0, 0)),
            pl.BlockSpec((C_out, 1), lambda g: (0, 0)),
        ],
        out_specs=pl.BlockSpec((TB, C_out, L_out_pad), lambda g: (g, 0, 0)),
        compiler_params=pltpu.CompilerParams(
            dimension_semantics=("parallel",),
            vmem_limit_bytes=_VMEM_LIMIT),
    )(x_p, w_flat, scale, shift)

    return out_pad[:, :, :L_out]   # identity slice when L_out is already a 128-multiple


# -------------------- pure-JAX reference (PyTorch train-mode forward) --------------------
def reference(x, weight, gamma, beta):
    y = lax.conv_general_dilated(
        x, weight, window_strides=(1,), padding="VALID",
        dimension_numbers=("NCH", "OIH", "NCH"))
    mean = jnp.mean(y, axis=(0, 2), keepdims=True)
    var = jnp.mean((y - mean) ** 2, axis=(0, 2), keepdims=True)
    yn = (y - mean) * lax.rsqrt(var + EPS) * gamma[None, :, None] + beta[None, :, None]
    return yn * jnp.tanh(jax.nn.softplus(yn))


if __name__ == "__main__":
    # Small shapes consistent with Conv1d: batch=2, in_channels=4, length=16,
    # out_channels=8, kernel_size=3.
    N, C_in, L = 2, 4, 16
    C_out, K = 8, 3

    key = jax.random.PRNGKey(0)
    kx, kw, kg, kb = jax.random.split(key, 4)
    x = jax.random.normal(kx, (N, C_in, L), dtype=jnp.float32)
    weight = jax.random.normal(kw, (C_out, C_in, K), dtype=jnp.float32) * 0.1
    gamma = 1.0 + 0.1 * jax.random.normal(kg, (C_out,), dtype=jnp.float32)
    beta = 0.1 * jax.random.normal(kb, (C_out,), dtype=jnp.float32)

    out = conv1d_bn_mish(x, weight, gamma, beta)
    out = jax.block_until_ready(out)

    ref = reference(x, weight, gamma, beta)
    assert out.shape == (N, C_out, L - K + 1)
    err = float(jnp.max(jnp.abs(out - ref)))
    assert jnp.allclose(out, ref, atol=1e-4, rtol=1e-4), err

    print("KERNEL_OK")
</pallas_src>

<mosaic_0001>
module attributes {stable_mosaic.version = 11 : i64} {
  func.func @stats_kernel(%arg0: i32, %arg1: memref<2x8x256xf32, #tpu.memory_space<vmem>>, %arg2: memref<8x24xf32, #tpu.memory_space<vmem>>, %arg3: memref<8x1xf32, #tpu.memory_space<vmem>>, %arg4: memref<8x1xf32, #tpu.memory_space<vmem>>, %arg5: memref<8x1xf32, #tpu.memory_space<vmem>>, %arg6: memref<8x1xf32, #tpu.memory_space<vmem>>, %arg7: memref<8x128xf32, #tpu.memory_space<vmem>>, %arg8: memref<8x128xf32, #tpu.memory_space<vmem>>) attributes {dimension_semantics = [#tpu.dimension_semantics<arbitrary>], iteration_bounds = array<i64: 1>, scalar_prefetch = 0 : i64, scratch_operands = 2 : i64, tpu.core_type = #tpu.core_type<tc>, window_params = [{transform_indices = @transform_0, window_bounds = array<i64: 2, 8, 256>}, {pipeline_mode = #tpu.pipeline_mode<synchronous>, transform_indices = @transform_1, window_bounds = array<i64: 8, 24>}, {pipeline_mode = #tpu.pipeline_mode<synchronous>, transform_indices = @transform_2, window_bounds = array<i64: 8, 1>}, {pipeline_mode = #tpu.pipeline_mode<synchronous>, transform_indices = @transform_3, window_bounds = array<i64: 8, 1>}, {pipeline_mode = #tpu.pipeline_mode<synchronous>, transform_indices = @transform_4, window_bounds = array<i64: 8, 1>}, {pipeline_mode = #tpu.pipeline_mode<synchronous>, transform_indices = @transform_5, window_bounds = array<i64: 8, 1>}]} {
    %c0_i32 = arith.constant 0 : i32
    %0 = arith.cmpi eq, %arg0, %c0_i32 : i32
    %1 = arith.extui %0 : i1 to i32
    %c0_i32_0 = arith.constant 0 : i32
    %2 = arith.cmpi ne, %1, %c0_i32_0 : i32
    scf.if %2 {
      %cst_28 = arith.constant 0.000000e+00 : f32
      %36 = vector.broadcast %cst_28 : f32 to vector<8x128xf32>
      %c0_29 = arith.constant 0 : index
      %c0_30 = arith.constant 0 : index
      %37 = vector.load %arg7[%c0_29, %c0_30] : memref<8x128xf32, #tpu.memory_space<vmem>>, vector<8x128xf32>
      tpu.vector_store %arg7[%c0_29, %c0_30], %36 {strides = array<i32>} : memref<8x128xf32, #tpu.memory_space<vmem>>, vector<8x128xf32>,
      %cst_31 = arith.constant 0.000000e+00 : f32
      %38 = vector.broadcast %cst_31 : f32 to vector<8x128xf32>
      %c0_32 = arith.constant 0 : index
      %c0_33 = arith.constant 0 : index
      %39 = vector.load %arg8[%c0_32, %c0_33] : memref<8x128xf32, #tpu.memory_space<vmem>>, vector<8x128xf32>
      tpu.vector_store %arg8[%c0_32, %c0_33], %38 {strides = array<i32>} : memref<8x128xf32, #tpu.memory_space<vmem>>, vector<8x128xf32>,
    } else {
    }
    %c0 = arith.constant 0 : index
    %c0_1 = arith.constant 0 : index
    %c0_2 = arith.constant 0 : index
    %3 = vector.load %arg1[%c0, %c0_1, %c0_2] : memref<2x8x256xf32, #tpu.memory_space<vmem>>, vector<1x8x256xf32>
    %4 = vector.shape_cast %3 : vector<1x8x256xf32> to vector<8x256xf32>
    %5 = vector.extract_strided_slice %4 {offsets = [0, 0], sizes = [8, 128], strides = [1, 1]} : vector<8x256xf32> to vector<8x128xf32>
    %6 = vector.extract_strided_slice %4 {offsets = [0, 1], sizes = [8, 128], strides = [1, 1]} : vector<8x256xf32> to vector<8x128xf32>
    %7 = vector.extract_strided_slice %4 {offsets = [0, 2], sizes = [8, 128], strides = [1, 1]} : vector<8x256xf32> to vector<8x128xf32>
    %8 = tpu.concatenate %5, %6, %7 in 0 : vector<8x128xf32>, vector<8x128xf32>, vector<8x128xf32> -> vector<24x128xf32>
    %c0_3 = arith.constant 0 : index
    %c0_4 = arith.constant 0 : index
    %9 = vector.load %arg2[%c0_3, %c0_4] : memref<8x24xf32, #tpu.memory_space<vmem>>, vector<8x24xf32>
    %cst = arith.constant dense<0.000000e+00> : vector<8x128xf32>
    %10 = tpu.matmul %9, %8, %cst {dimension_numbers = #tpu.dot_dimension_numbers<[1], [0], [0], [1], [0, 0, 1, 1], [], []>} : vector<8x24xf32>, vector<24x128xf32>, vector<8x128xf32> -> vector<8x128xf32>
    %c0_5 = arith.constant 0 : index
    %c0_6 = arith.constant 0 : index
    %11 = vector.load %arg7[%c0_5, %c0_6] : memref<8x128xf32, #tpu.memory_space<vmem>>, vector<8x128xf32>
    %12 = arith.addf %11, %10 : vector<8x128xf32>
    %c0_7 = arith.constant 0 : index
    %c0_8 = arith.constant 0 : index
    %13 = vector.load %arg7[%c0_7, %c0_8] : memref<8x128xf32, #tpu.memory_space<vmem>>, vector<8x128xf32>
    tpu.vector_store %arg7[%c0_7, %c0_8], %12 {strides = array<i32>} : memref<8x128xf32, #tpu.memory_space<vmem>>, vector<8x128xf32>,
    %c0_9 = arith.constant 0 : index
    %c0_10 = arith.constant 0 : index
    %14 = vector.load %arg8[%c0_9, %c0_10] : memref<8x128xf32, #tpu.memory_space<vmem>>, vector<8x128xf32>
    %15 = arith.mulf %10, %10 : vector<8x128xf32>
    %16 = arith.addf %14, %15 : vector<8x128xf32>
    %c0_11 = arith.constant 0 : index
    %c0_12 = arith.constant 0 : index
    %17 = vector.load %arg8[%c0_11, %c0_12] : memref<8x128xf32, #tpu.memory_space<vmem>>, vector<8x128xf32>
    tpu.vector_store %arg8[%c0_11, %c0_12], %16 {strides = array<i32>} : memref<8x128xf32, #tpu.memory_space<vmem>>, vector<8x128xf32>,
    %c1 = arith.constant 1 : index
    %c0_13 = arith.constant 0 : index
    %c0_14 = arith.constant 0 : index
    %18 = vector.load %arg1[%c1, %c0_13, %c0_14] : memref<2x8x256xf32, #tpu.memory_space<vmem>>, vector<1x8x256xf32>
    %19 = vector.shape_cast %18 : vector<1x8x256xf32> to vector<8x256xf32>
    %20 = vector.extract_strided_slice %19 {offsets = [0, 0], sizes = [8, 128], strides = [1, 1]} : vector<8x256xf32> to vector<8x128xf32>
    %21 = vector.extract_strided_slice %19 {offsets = [0, 1], sizes = [8, 128], strides = [1, 1]} : vector<8x256xf32> to vector<8x128xf32>
    %22 = vector.extract_strided_slice %19 {offsets = [0, 2], sizes = [8, 128], strides = [1, 1]} : vector<8x256xf32> to vector<8x128xf32>
    %23 = tpu.concatenate %20, %21, %22 in 0 : vector<8x128xf32>, vector<8x128xf32>, vector<8x128xf32> -> vector<24x128xf32>
    %c0_15 = arith.constant 0 : index
    %c0_16 = arith.constant 0 : index
    %24 = vector.load %arg2[%c0_15, %c0_16] : memref<8x24xf32, #tpu.memory_space<vmem>>, vector<8x24xf32>
    %cst_17 = arith.constant dense<0.000000e+00> : vector<8x128xf32>
    %25 = tpu.matmul %24, %23, %cst_17 {dimension_numbers = #tpu.dot_dimension_numbers<[1], [0], [0], [1], [0, 0, 1, 1], [], []>} : vector<8x24xf32>, vector<24x128xf32>, vector<8x128xf32> -> vector<8x128xf32>
    %c0_18 = arith.constant 0 : index
    %c0_19 = arith.constant 0 : index
    %26 = vector.load %arg7[%c0_18, %c0_19] : memref<8x128xf32, #tpu.memory_space<vmem>>, vector<8x128xf32>
    %27 = arith.addf %26, %25 : vector<8x128xf32>
    %c0_20 = arith.constant 0 : index
    %c0_21 = arith.constant 0 : index
    %28 = vector.load %arg7[%c0_20, %c0_21] : memref<8x128xf32, #tpu.memory_space<vmem>>, vector<8x128xf32>
    tpu.vector_store %arg7[%c0_20, %c0_21], %27 {strides = array<i32>} : memref<8x128xf32, #tpu.memory_space<vmem>>, vector<8x128xf32>,
    %c0_22 = arith.constant 0 : index
    %c0_23 = arith.constant 0 : index
    %29 = vector.load %arg8[%c0_22, %c0_23] : memref<8x128xf32, #tpu.memory_space<vmem>>, vector<8x128xf32>
    %30 = arith.mulf %25, %25 : vector<8x128xf32>
    %31 = arith.addf %29, %30 : vector<8x128xf32>
    %c0_24 = arith.constant 0 : index
    %c0_25 = arith.constant 0 : index
    %32 = vector.load %arg8[%c0_24, %c0_25] : memref<8x128xf32, #tpu.memory_space<vmem>>, vector<8x128xf32>
    tpu.vector_store %arg8[%c0_24, %c0_25], %31 {strides = array<i32>} : memref<8x128xf32, #tpu.memory_space<vmem>>, vector<8x128xf32>,
    %c0_i32_26 = arith.constant 0 : i32
    %33 = arith.cmpi eq, %arg0, %c0_i32_26 : i32
    %34 = arith.extui %33 : i1 to i32
    %c0_i32_27 = arith.constant 0 : i32
    %35 = arith.cmpi ne, %34, %c0_i32_27 : i32
    scf.if %35 {
      %36 = tpu.iota {dimensions = array<i32: 1>} : vector<8x128xi32>
      %c14_i32 = arith.constant 14 : i32
      %37 = vector.broadcast %c14_i32 : i32 to vector<8x128xi32>
      %38 = arith.cmpi slt, %36, %37 : vector<8x128xi32>
      %c0_28 = arith.constant 0 : index
      %c0_29 = arith.constant 0 : index
      %39 = vector.load %arg7[%c0_28, %c0_29] : memref<8x128xf32, #tpu.memory_space<vmem>>, vector<8x128xf32>
      %cst_30 = arith.constant 0.000000e+00 : f32
      %40 = vector.broadcast %cst_30 : f32 to vector<8x128xf32>
      %41 = arith.select %38, %39, %40 : vector<8x128xi1>, vector<8x128xf32>
      %cst_31 = arith.constant dense<0.000000e+00> : vector<8xf32>
      %42 = vector.multi_reduction <add>, %41, %cst_31 [1] : vector<8x128xf32> to vector<8xf32>
      %43 = vector.shape_cast %42 : vector<8xf32> to vector<8x1xf32>
      %c0_32 = arith.constant 0 : index
      %c0_33 = arith.constant 0 : index
      %44 = vector.load %arg8[%c0_32, %c0_33] : memref<8x128xf32, #tpu.memory_space<vmem>>, vector<8x128xf32>
      %cst_34 = arith.constant 0.000000e+00 : f32
      %45 = vector.broadcast %cst_34 : f32 to vector<8x128xf32>
      %46 = arith.select %38, %44, %45 : vector<8x128xi1>, vector<8x128xf32>
      %cst_35 = arith.constant dense<0.000000e+00> : vector<8xf32>
      %47 = vector.multi_reduction <add>, %46, %cst_35 [1] : vector<8x128xf32> to vector<8xf32>
      %48 = vector.shape_cast %47 : vector<8xf32> to vector<8x1xf32>
      %cst_36 = arith.constant 0.0357142873 : f32
      %49 = vector.broadcast %cst_36 : f32 to vector<8x1xf32>
      %50 = arith.mulf %43, %49 : vector<8x1xf32>
      %cst_37 = arith.constant 0.0357142873 : f32
      %51 = vector.broadcast %cst_37 : f32 to vector<8x1xf32>
      %52 = arith.mulf %48, %51 : vector<8x1xf32>
      %53 = arith.mulf %50, %50 : vector<8x1xf32>
      %54 = arith.subf %52, %53 : vector<8x1xf32>
      %cst_38 = arith.constant 0.000000e+00 : f32
      %55 = vector.broadcast %cst_38 : f32 to vector<8x1xf32>
      %56 = arith.maximumf %54, %55 : vector<8x1xf32>
      %c0_39 = arith.constant 0 : index
      %c0_40 = arith.constant 0 : index
      %57 = vector.load %arg3[%c0_39, %c0_40] : memref<8x1xf32, #tpu.memory_space<vmem>>, vector<8x1xf32>
      %cst_41 = arith.constant 9.99999974E-6 : f32
      %58 = vector.broadcast %cst_41 : f32 to vector<8x1xf32>
      %59 = arith.addf %56, %58 : vector<8x1xf32>
      %60 = math.rsqrt %59 : vector<8x1xf32>
      %61 = arith.mulf %57, %60 : vector<8x1xf32>
      %c0_42 = arith.constant 0 : index
      %c0_43 = arith.constant 0 : index
      %62 = vector.load %arg5[%c0_42, %c0_43] : memref<8x1xf32, #tpu.memory_space<vmem>>, vector<8x1xf32>
      tpu.vector_store %arg5[%c0_42, %c0_43], %61 {strides = array<i32>} : memref<8x1xf32, #tpu.memory_space<vmem>>, vector<8x1xf32>,
      %c0_44 = arith.constant 0 : index
      %c0_45 = arith.constant 0 : index
      %63 = vector.load %arg4[%c0_44, %c0_45] : memref<8x1xf32, #tpu.memory_space<vmem>>, vector<8x1xf32>
      %64 = arith.mulf %50, %61 : vector<8x1xf32>
      %65 = arith.subf %63, %64 : vector<8x1xf32>
      %c0_46 = arith.constant 0 : index
      %c0_47 = arith.constant 0 : index
      %66 = vector.load %arg6[%c0_46, %c0_47] : memref<8x1xf32, #tpu.memory_space<vmem>>, vector<8x1xf32>
      tpu.vector_store %arg6[%c0_46, %c0_47], %65 {strides = array<i32>} : memref<8x1xf32, #tpu.memory_space<vmem>>, vector<8x1xf32>,
    } else {
    }
    return
  }
  func.func @transform_0(%arg0: i32) -> (i32, i32, i32) {
    %c0_i32 = arith.constant 0 : i32
    %c0_i32_0 = arith.constant 0 : i32
    %c0_i32_1 = arith.constant 0 : i32
    return %arg0, %c0_i32, %c0_i32_0 : i32, i32, i32
  }
  func.func @transform_1(%arg0: i32) -> (i32, i32) {
    %c0_i32 = arith.constant 0 : i32
    %c0_i32_0 = arith.constant 0 : i32
    %c0_i32_1 = arith.constant 0 : i32
    return %c0_i32, %c0_i32_0 : i32, i32
  }
  func.func @transform_2(%arg0: i32) -> (i32, i32) {
    %c0_i32 = arith.constant 0 : i32
    %c0_i32_0 = arith.constant 0 : i32
    %c0_i32_1 = arith.constant 0 : i32
    return %c0_i32, %c0_i32_0 : i32, i32
  }
  func.func @transform_3(%arg0: i32) -> (i32, i32) {
    %c0_i32 = arith.constant 0 : i32
    %c0_i32_0 = arith.constant 0 : i32
    %c0_i32_1 = arith.constant 0 : i32
    return %c0_i32, %c0_i32_0 : i32, i32
  }
  func.func @transform_4(%arg0: i32) -> (i32, i32) {
    %c0_i32 = arith.constant 0 : i32
    %c0_i32_0 = arith.constant 0 : i32
    %c0_i32_1 = arith.constant 0 : i32
    return %c0_i32, %c0_i32_0 : i32, i32
  }
  func.func @transform_5(%arg0: i32) -> (i32, i32) {
    %c0_i32 = arith.constant 0 : i32
    %c0_i32_0 = arith.constant 0 : i32
    %c0_i32_1 = arith.constant 0 : i32
    return %c0_i32, %c0_i32_0 : i32, i32
  }
}

</mosaic_0001>

<bundles_post_ra>
// kernel: tpu_custom_call.1
= control target key start
LH: loop header
LB: loop body
LE: loop exit
PB: predicated region body
PF: predicated region fallthrough
CT: control target
= control target key end

     0   :  { %11 = vsyncpa [#allocation5], 0  ;;  %s241_s21 = smov [#allocation4]   ;;  %s242_s23 = smov 256   ;;  %s298_s0 = inlined_call_operand.hbm [shape: f32[2,8,256], index: 0, kind: input, shape index: {}]   ;;  %s299_s1 = inlined_call_operand.vmem [shape: f32[8,24], index: 1, kind: input, shape index: {}]   ;;  %s300_s2 = inlined_call_operand.vmem [shape: f32[8,1], index: 2, kind: input, shape index: {}]   ;;  %s301_s3 = inlined_call_operand.vmem [shape: f32[8,1], index: 3, kind: input, shape index: {}]   ;;  %s302_s4 = inlined_call_operand.vmem [shape: f32[8,1], index: 4, kind: output, shape index: {0}]   ;;  %s303_s5 = inlined_call_operand.vmem [shape: f32[8,1], index: 5, kind: output, shape index: {1}]  }
   0x1   :  { %s16_s20 = sshll.u32 %s298_s0, 4  ;;  %s18_s22 = sshll.u32 %s241_s21, 4  ;;  %s17_s20 = int_to_ptr.hbm [resolvable:$true] %s16_s20  ;;  %s19_s22 = int_to_ptr.vmem [resolvable:$true] %s18_s22 }
   0x2   :  { %s243_s24 = smov 16  }
   0x3   :  { %24 = dma.hbm_to_vmem [thread:$0]  %s17_s20, 512, %s19_s22, [#allocation5], %s242_s23, %s242_s23, %s243_s24  }
   0x4   :  { %239 = dma.done.wait [#allocation5], 512  }
   0x5   :  { %240 = vsyncadd [#allocation5], 4294966784  ;;  %v41_v0 = vld [vmem:[#allocation4] sm:$0xff]  ;;  %v42_v1 = vld [vmem:[#allocation4 + $0x8] sm:$0xff]  ;;  %s244_s25 = smov 126   ;;  %s245_s26 = smov 127   ;;  %v142_v23 = vlaneseq }
   0x6   :  { %v193_v2 = vpack.i.bf16 %v42_v1, %v41_v0  ;;  %v92_v3 = vld [vmem:[#allocation4 + $0x10] sm:$0xff]  ;;  %v93_v4 = vld [vmem:[#allocation4 + $0x18] sm:$0xff]  ;;  %vm56_vm0 = vcmask 1031168   ;;  %vm49_vm1 = vcmask 1039360   ;;  %v59_v14 = vld [vmem:[%s299_s1] sm:$0xff]  ;;  %vm60_vm2 = vcmask 195584  }
   0x7   :  { %v198_v5 = vpack.i.bf16 %v93_v4, %v92_v3  ;;  %v143_v24 = vand.u32 127, %v142_v23  ;;  %v158_v46 = vld [vmem:[%s300_s2] sm:$0xff]  ;;  %vm171_vm7 = vcmask 7168  }
   0x8   :  { %194 = vrot.lane.b32.xlu0 %v193_v2, %s244_s25  ;;  %204 = vrot.lane.b32.xlu1 %v193_v2, %s245_s26  ;;  %v173_v50 = vld [vmem:[%s301_s3] sm:$0xff] }
   0x9   :  { %vm144_vm3 = vcmp.lt.s32.totalorder %v143_v24, 14 }
  0x10   :  { %199 = vrot.lane.b32.xlu0 %v198_v5, %s244_s25  ;;  %209 = vrot.lane.b32.xlu1 %v198_v5, %s245_s26 }
  0x7a   :  { %v195_v6 = vpop.permute.xlu0 %194  ;;  %v205_v7 = vpop.permute.xlu1 %204 }
  0x7b   :  { %v197_v8 = vunpack.i.h.bf16 %v195_v6  ;;  %v196_v9 = vunpack.i.l.bf16 %v195_v6  ;;  %v207_v10 = vunpack.i.h.bf16 %v205_v7  ;;  %v206_v11 = vunpack.i.l.bf16 %v205_v7 }
  0x7d   :  { %v57_v12 = vsel %vm56_vm0, %v196_v9, %v197_v8  ;;  %v50_v13 = vsel %vm49_vm1, %v206_v11, %v207_v10 }
  0x7e   :  { %77 = vmatpush.msra.mxu0 %v57_v12 }
  0x80   :  { %78 = vmatpush.msra.mxu0 %v50_v13 }
  0x82   :  { %v200_v15 = vpop.permute.xlu0 %199  ;;  %v210_v16 = vpop.permute.xlu1 %209  ;;  %79 = vmatpush.msra.mxu0 %v41_v0 }
  0x83   :  { %v202_v17 = vunpack.i.h.bf16 %v200_v15  ;;  %v201_v18 = vunpack.i.l.bf16 %v200_v15  ;;  %v212_v19 = vunpack.i.h.bf16 %v210_v16  ;;  %v211_v20 = vunpack.i.l.bf16 %v210_v16  ;;  %186 = vmatmul.msk.f32.vlgmr.msra.gmra.mxu0 %vm60_vm2, %v59_v14 }
  0x85   :  { %v106_v21 = vsel %vm56_vm0, %v201_v18, %v202_v17  ;;  %v100_v22 = vsel %vm49_vm1, %v211_v20, %v212_v19 }
  0x86   :  { %125 = vmatpush.msra.mxu1 %v106_v21 }
  0x88   :  { %126 = vmatpush.msra.mxu1 %v100_v22 }
  0x8a   :  { %127 = vmatpush.msra.mxu1 %v92_v3 }
  0x8b   :  { %187 = vmatmul.msk.f32.vlgmr.msra.gmra.mxu1 %vm60_vm2, %v59_v14 }
 0x100   :  { %v81_v25 = vpop.f32.mrf.mxu0 }
 0x101   :  { %v88_v28 = vmul.f32 %v81_v25, %v81_v25 }
 0x108   :  { %v129_v26 = vpop.f32.mrf.mxu1 }
 0x109   :  { %v133_v27 = vadd.f32 %v129_v26, %v81_v25  ;;  %v136_v29 = vmul.f32 %v129_v26, %v129_v26 }
 0x10b   :  { %v146_v30 = vsel %vm144_vm3, %v133_v27, 0.0  ;;  %v137_v31 = vadd.f32 %v136_v29, %v88_v28 }
 0x10c   :  { %147 = vadd.xlane.f32.xlu2 %v146_v30 }
 0x10d   :  { %v150_v32 = vsel %vm144_vm3, %v137_v31, 0.0 }
 0x114   :  { %151 = vadd.xlane.f32.xlu2 %v150_v32 }
 0x17f   :  { %v148_v33 = vpop.xlane.xlu2 %147 }
 0x180   :  { %v153_v34 = vmul.f32 0.035714287, %v148_v33 }
 0x182   :  { %v155_v36 = vmul.f32 %v153_v34, %v153_v34 }
 0x187   :  { %v152_v35 = vpop.xlane.xlu2 %151 }
 0x188   :  { %v154_v37 = vmul.f32 0.035714287, %v152_v35 }
 0x18a   :  { %v156_v38 = vsub.f32 %v154_v37, %v155_v36 }
 0x18c   :  { %v157_v39 = vmax.f32 %v156_v38, 0.0 }
 0x18e   :  { %v159_v40 = vadd.f32 1e-05, %v157_v39 }
 0x190   :  { %213 = vrsqrt.f32 %v159_v40  ;;  %vm166_vm5 = vweird.f32 %v159_v40 }
 0x196   :  { %v214_v41 = vpop.eup %213 }
 0x197   :  { %v161_v42 = vmul.f32 %v214_v41, %v159_v40  ;;  %vm167_vm4 = vweird.f32 %v214_v41 }
 0x198   :  { %vm168_vm6 = vmor %vm166_vm5, %vm167_vm4 }
 0x199   :  { %v162_v43 = vmul.f32 %v214_v41, %v161_v42 }
 0x19b   :  { %v163_v44 = vmul.f32 0.5, %v162_v43 }
 0x19d   :  { %v164_v45 = vsub.f32 1.5, %v163_v44 }
 0x19f   :  { %v165_v47 = vmul.f32 %v214_v41, %v164_v45 }
 0x1a1   :  { %v169_v48 = vsel %vm168_vm6, %v214_v41, %v165_v47 }
 0x1a2   :  { %v170_v49 = vmul.f32 %v169_v48, %v158_v46 }
 0x1a4   :  { %172 = vst.msk [vmem:[%s302_s4] sm:$0xff] %vm171_vm7, %v170_v49  ;;  %v174_v51 = vmul.f32 %v170_v49, %v153_v34 }
 0x1a6   :  { %v175_v52 = vsub.f32 %v173_v50, %v174_v51 }
 0x1a8   :  { %176 = vst.msk [vmem:[%s303_s5] sm:$0xff] %vm171_vm7, %v175_v52 }
 0x1a9   :  { %185 = vsyncpa [#allocation5], 1 }

</bundles_post_ra>
